<compile_context>
chip_gen: v7x
topology: tpu7x:2x2x1
jax: 0.10.0
libtpu: 0.0.40
codegen_flags: <defaults>
</compile_context>

<pallas_src>
import math

import jax
import jax.numpy as jnp
from jax.experimental import pallas as pl
from jax.experimental.pallas import tpu as pltpu


def _pos_embed_store_kernel(tab_y_ref, tab_x_ref, out_ref):
    """Pure broadcast-and-store body (no per-element transcendentals).

    tab_y_ref : (F, th, 1)   y-half table slice for this row-tile
    tab_x_ref : (F, 1,  W)   x-half table (full width, constant across steps)
    out_ref   : (C=2F, th, W) output block (batch dim squeezed away)
    """
    F, th, _ = tab_y_ref.shape
    W = tab_x_ref.shape[-1]
    dt = out_ref.dtype
    # y-half: out[c, h, w] = tab_y[c, h]    (lane-splat across W)
    out_ref[0:F, :, :] = jnp.broadcast_to(tab_y_ref[...], (F, th, W)).astype(dt)
    # x-half: out[F+c, h, w] = tab_x[c, w]  (sublane-splat across th)
    out_ref[F:, :, :] = jnp.broadcast_to(tab_x_ref[...], (F, th, W)).astype(dt)


def position_embedding_sine(x, num_pos_feats=64, temperature=10000.0,
                            normalize=False, scale=None,
                            out_dtype=jnp.float32,
                            max_block_bytes=8 * 1024 * 1024):
    """Pallas equivalent of PositionEmbeddingSine.forward.

    x is NCHW; only its shape matters (the module builds an all-zeros mask).
    Returns (B, 2*num_pos_feats, H, W) in `out_dtype`.
    """
    if scale is not None and not normalize:
        raise ValueError("normalize should be True if scale is passed")
    if scale is None:
        scale = 2.0 * math.pi
    if num_pos_feats % 2 != 0:
        # The torch.stack(sin, cos) interleave requires an even feature count.
        raise ValueError("num_pos_feats must be even")

    B, _, H, W = x.shape
    F = num_pos_feats
    C = 2 * F
    eps = 1e-6

    # ---- tiny per-axis sin/cos tables (F*(H+W) transcendentals, wrapper-side) ----
    k = jnp.arange(F, dtype=jnp.float32)
    dim_t = temperature ** (2.0 * jnp.floor(k / 2.0) / F)             # (F,)
    h = jnp.arange(1, H + 1, dtype=jnp.float32)                       # cumsum of ones
    w = jnp.arange(1, W + 1, dtype=jnp.float32)
    if normalize:
        h = h / (H + eps) * scale
        w = w / (W + eps) * scale
    ang_y = h[None, :] / dim_t[:, None]                                # (F, H)
    ang_x = w[None, :] / dim_t[:, None]                                # (F, W)
    odd = (jnp.arange(F) % 2 == 1)[:, None]                            # odd channel -> cos
    tab_y = jnp.where(odd, jnp.cos(ang_y), jnp.sin(ang_y)).astype(jnp.float32)
    tab_x = jnp.where(odd, jnp.cos(ang_x), jnp.sin(ang_x)).astype(jnp.float32)
    tab_y = tab_y.reshape(F, H, 1)                                     # minor dim 1: lane-splat source
    tab_x = tab_x.reshape(F, 1, W)                                     # minor dim W: sublane-splat source

    # ---- row-tile (th) selection, VMEM-footprint aware ------------------------
    isize = jnp.dtype(out_dtype).itemsize
    padded_w = ((W + 127) // 128) * 128
    # VMEM bytes per block row: lane-padded output row + lane-padded (F, th, 1)
    # y-table row (each scalar occupies a full 128-lane vreg row in VMEM).
    vmem_bytes_per_row = C * padded_w * isize + F * 128 * 4
    th_cap = max(1, int(max_block_bytes) // vmem_bytes_per_row)
    if th_cap >= H:
        th = H
    elif th_cap >= 8:
        th = (th_cap // 8) * 8                       # multiple of 8 (legal block dim)
    else:
        th = min(8, H)
    # v7x: expose >= 2 total grid steps so both TensorCores get work
    # (no effect on single-TC v5e/v6e).
    if B * pl.cdiv(H, th) < 2 and H >= 16:
        th = min(H, ((pl.cdiv(H, 2) + 7) // 8) * 8)
    n_h = pl.cdiv(H, th)
    grid = (B, n_h)

    # Scoped-VMEM budget: double-buffered blocks (padded layouts) + slack.
    def _padded_bytes(shape3, item):
        s0, s1, s2 = shape3
        return s0 * (((s1 + 7) // 8) * 8) * (((s2 + 127) // 128) * 128) * item

    vmem_need = 2 * (_padded_bytes((C, th, W), isize)
                     + _padded_bytes((F, th, 1), 4)
                     + _padded_bytes((F, 1, W), 4)) + (2 << 20)
    cp_kwargs = dict(dimension_semantics=("parallel", "parallel"))
    if vmem_need > (16 << 20):                      # only raise above smallest default
        cp_kwargs["vmem_limit_bytes"] = int(min(vmem_need, 48 << 20))

    out = pl.pallas_call(
        _pos_embed_store_kernel,
        out_shape=jax.ShapeDtypeStruct((B, C, H, W), out_dtype),
        grid=grid,
        in_specs=[
            pl.BlockSpec((F, th, 1), lambda b, i: (0, i, 0)),   # y table row-tile
            pl.BlockSpec((F, 1, W), lambda b, i: (0, 0, 0)),    # x table, constant
        ],
        out_specs=pl.BlockSpec((None, C, th, W), lambda b, i: (b, 0, i, 0)),
        compiler_params=pltpu.CompilerParams(**cp_kwargs),
    )(tab_y, tab_x)
    return out


def position_embedding_sine_ref(x, num_pos_feats=64, temperature=10000.0,
                                normalize=False, scale=None):
    """Pure-JAX transliteration of the PyTorch forward, for verification."""
    if scale is None:
        scale = 2.0 * math.pi
    B, _, H, W = x.shape
    not_mask = jnp.ones((B, H, W), jnp.float32)
    y_embed = jnp.cumsum(not_mask, axis=1)
    x_embed = jnp.cumsum(not_mask, axis=2)
    if normalize:
        eps = 1e-6
        y_embed = y_embed / (y_embed[:, -1:, :] + eps) * scale
        x_embed = x_embed / (x_embed[:, :, -1:] + eps) * scale
    dim_t = jnp.arange(num_pos_feats, dtype=jnp.float32)
    dim_t = temperature ** (2.0 * jnp.floor(dim_t / 2.0) / num_pos_feats)
    pos_x = x_embed[..., None] / dim_t
    pos_y = y_embed[..., None] / dim_t
    pos_x = jnp.stack((jnp.sin(pos_x[..., 0::2]), jnp.cos(pos_x[..., 1::2])),
                      axis=4).reshape(B, H, W, -1)
    pos_y = jnp.stack((jnp.sin(pos_y[..., 0::2]), jnp.cos(pos_y[..., 1::2])),
                      axis=4).reshape(B, H, W, -1)
    pos = jnp.concatenate((pos_y, pos_x), axis=3)
    return jnp.transpose(pos, (0, 3, 1, 2))


if __name__ == "__main__":
    key = jax.random.PRNGKey(0)

    # Default config (normalize=False), PyTorch-style NCHW input.
    x = jax.random.normal(key, (2, 4, 16, 16), dtype=jnp.float32)
    out = jax.block_until_ready(position_embedding_sine(x, num_pos_feats=64))
    ref = position_embedding_sine_ref(x, num_pos_feats=64)
    assert out.shape == (2, 128, 16, 16), out.shape
    assert jnp.allclose(out, ref, atol=1e-5, rtol=1e-5)

    # Normalized variant.
    out_n = jax.block_until_ready(
        position_embedding_sine(x, num_pos_feats=64, normalize=True))
    ref_n = position_embedding_sine_ref(x, num_pos_feats=64, normalize=True)
    assert jnp.allclose(out_n, ref_n, atol=1e-5, rtol=1e-5)

    # Multi-row-tile grid path (forces th=8 -> grid (2, 2)).
    out_t = jax.block_until_ready(
        position_embedding_sine(x, num_pos_feats=64, normalize=True,
                                max_block_bytes=64 * 1024))
    assert jnp.allclose(out_t, ref_n, atol=1e-5, rtol=1e-5)

    # Non-square map, H not a multiple of 8 (th == H full-dim block path).
    x2 = jax.random.normal(key, (1, 3, 12, 20), dtype=jnp.float32)
    ref2 = position_embedding_sine_ref(x2, num_pos_feats=64, normalize=True)
    out2 = jax.block_until_ready(
        position_embedding_sine(x2, num_pos_feats=64, normalize=True))
    assert out2.shape == (1, 128, 12, 20), out2.shape
    assert jnp.allclose(out2, ref2, atol=1e-5, rtol=1e-5)

    # Partial last row-tile (th=8 over H=12).
    out2_t = jax.block_until_ready(
        position_embedding_sine(x2, num_pos_feats=64, normalize=True,
                                max_block_bytes=64 * 1024))
    assert jnp.allclose(out2_t, ref2, atol=1e-5, rtol=1e-5)

    # bf16 output path (halves HBM writeback); looser tolerance vs fp32 reference.
    out_bf = jax.block_until_ready(
        position_embedding_sine(x, num_pos_feats=64, normalize=True,
                                out_dtype=jnp.bfloat16))
    assert out_bf.dtype == jnp.bfloat16
    assert jnp.allclose(out_bf.astype(jnp.float32), ref_n, atol=8e-3, rtol=8e-3)

    print("KERNEL_OK")
</pallas_src>

<mosaic_0001>
module attributes {stable_mosaic.version = 11 : i64} {
  func.func @_pos_embed_store_kernel(%arg0: i32, %arg1: i32, %arg2: memref<64x16x1xf32, #tpu.memory_space<vmem>>, %arg3: memref<64x1x16xf32, #tpu.memory_space<vmem>>, %arg4: memref<1x128x16x16xf32, #tpu.memory_space<vmem>>) attributes {dimension_semantics = [#tpu.dimension_semantics<parallel>, #tpu.dimension_semantics<parallel>], iteration_bounds = array<i64: 2, 1>, scalar_prefetch = 0 : i64, scratch_operands = 0 : i64, tpu.core_type = #tpu.core_type<tc>, window_params = [{transform_indices = @transform_0, window_bounds = array<i64: 64, 16, 1>}, {pipeline_mode = #tpu.pipeline_mode<synchronous>, transform_indices = @transform_1, window_bounds = array<i64: 64, 1, 16>}, {transform_indices = @transform_2, window_bounds = array<i64: 1, 128, 16, 16>}]} {
    %c0 = arith.constant 0 : index
    %c0_0 = arith.constant 0 : index
    %c0_1 = arith.constant 0 : index
    %0 = vector.load %arg2[%c0, %c0_0, %c0_1] : memref<64x16x1xf32, #tpu.memory_space<vmem>>, vector<64x16x1xf32>
    %1 = vector.shape_cast %0 : vector<64x16x1xf32> to vector<64x16x1xf32>
    %2 = vector.broadcast %1 : vector<64x16x1xf32> to vector<64x16x16xf32>
    %c0_2 = arith.constant 0 : index
    %c0_3 = arith.constant 0 : index
    %c0_4 = arith.constant 0 : index
    %c0_5 = arith.constant 0 : index
    %3 = vector.load %arg4[%c0_2, %c0_3, %c0_4, %c0_5] : memref<1x128x16x16xf32, #tpu.memory_space<vmem>>, vector<1x64x16x16xf32>
    %4 = vector.shape_cast %3 : vector<1x64x16x16xf32> to vector<64x16x16xf32>
    %5 = vector.shape_cast %2 : vector<64x16x16xf32> to vector<1x64x16x16xf32>
    tpu.vector_store %arg4[%c0_2, %c0_3, %c0_4, %c0_5], %5 {strides = array<i32>} : memref<1x128x16x16xf32, #tpu.memory_space<vmem>>, vector<1x64x16x16xf32>,
    %c0_6 = arith.constant 0 : index
    %c0_7 = arith.constant 0 : index
    %c0_8 = arith.constant 0 : index
    %6 = vector.load %arg3[%c0_6, %c0_7, %c0_8] : memref<64x1x16xf32, #tpu.memory_space<vmem>>, vector<64x1x16xf32>
    %7 = vector.shape_cast %6 : vector<64x1x16xf32> to vector<64x1x16xf32>
    %8 = vector.broadcast %7 : vector<64x1x16xf32> to vector<64x16x16xf32>
    %c0_9 = arith.constant 0 : index
    %c64 = arith.constant 64 : index
    %c0_10 = arith.constant 0 : index
    %c0_11 = arith.constant 0 : index
    %9 = vector.load %arg4[%c0_9, %c64, %c0_10, %c0_11] : memref<1x128x16x16xf32, #tpu.memory_space<vmem>>, vector<1x64x16x16xf32>
    %10 = vector.shape_cast %9 : vector<1x64x16x16xf32> to vector<64x16x16xf32>
    %11 = vector.shape_cast %8 : vector<64x16x16xf32> to vector<1x64x16x16xf32>
    tpu.vector_store %arg4[%c0_9, %c64, %c0_10, %c0_11], %11 {strides = array<i32>} : memref<1x128x16x16xf32, #tpu.memory_space<vmem>>, vector<1x64x16x16xf32>,
    return
  }
  func.func @transform_0(%arg0: i32, %arg1: i32) -> (i32, i32, i32) {
    %c0_i32 = arith.constant 0 : i32
    %c0_i32_0 = arith.constant 0 : i32
    %c0_i32_1 = arith.constant 0 : i32
    return %c0_i32, %arg1, %c0_i32_0 : i32, i32, i32
  }
  func.func @transform_1(%arg0: i32, %arg1: i32) -> (i32, i32, i32) {
    %c0_i32 = arith.constant 0 : i32
    %c0_i32_0 = arith.constant 0 : i32
    %c0_i32_1 = arith.constant 0 : i32
    %c0_i32_2 = arith.constant 0 : i32
    return %c0_i32, %c0_i32_0, %c0_i32_1 : i32, i32, i32
  }
  func.func @transform_2(%arg0: i32, %arg1: i32) -> (i32, i32, i32, i32) {
    %c0_i32 = arith.constant 0 : i32
    %c0_i32_0 = arith.constant 0 : i32
    %c0_i32_1 = arith.constant 0 : i32
    return %arg0, %c0_i32, %arg1, %c0_i32_0 : i32, i32, i32, i32
  }
}

</mosaic_0001>

<bundles_post_ra>
// kernel: tpu_custom_call.1
= control target key start
LH: loop header
LB: loop body
LE: loop exit
PB: predicated region body
PF: predicated region fallthrough
CT: control target
= control target key end

     0   :  { %s1996_s9 = smov 0   ;;  %s1998_s10 = smov 0   ;;  %s3120_s0 = inlined_call_operand.vmem [shape: f32[64,16,1], index: 0, kind: input, shape index: {}]   ;;  %s3121_s1 = inlined_call_operand.vmem [shape: f32[64,1,16], index: 1, kind: input, shape index: {}]   ;;  %s3122_s2 = inlined_call_operand.vmem [shape: f32[2,128,16,16], index: 2, kind: output, shape index: {}]  }
   0x1   :  { %s2000_s11 = smov 0  }
   0x2 LB: > { %s24_s12 = sadd.s32 1, %s1974_s10  ;;  %p1731_p0 = scmp.ge.s32.totalorder %s1978_s11, 1  ;;  %s1978_s11 = sphi %s2000_s11, %s12_s11   ;;  %s1974_s10 = sphi %s1998_s10, %s3124_s10   ;;  %s1970_s9 = sphi %s1996_s9, %s3123_s9  }
   0x3   : > { %p26_p1 = scmp.ge.s32.totalorder %s24_s12, 2  ;;  %p127_p2 = scmp.lt.s32.totalorder %s1978_s11, 3 }
   0x5   : > { %s3126_s12 = smov (%p26_p1, %s24_s12), 0  ;;  %p128_p3 = pnand %p1731_p0, %p127_p2 }
   0x6   : > { %v171_v0 = vld [vmem:[%s3120_s0 + $0x10] sm:$0xff] (!%p128_p3)  ;;  %v169_v1 = vld [vmem:[%s3120_s0] sm:$0xff] (!%p128_p3)  ;;  %v1980_v2 = vmov (!%p128_p3), 0   ;;  %v172_v3 = vld [vmem:[%s3120_s0 + $0x18] sm:$0xff] (!%p128_p3)  ;;  %p160_p4 = scmp.lt.s32.totalorder (!%p128_p3), %s1970_s9, 1  ;;  %vm937_vm0 = vcmask (!%p128_p3), 130048  }
   0x7   : > { %131 = sbr.rel (%p128_p3) target bundleno = 389 (0x185), region = 28  ;;  %1955 = vset.pattern.permute.xlu1 (!%p128_p3), %v1980_v2  ;;  %1954 = vset.pattern.permute.xlu0 (!%p128_p3), %v1980_v2  ;;  %v170_v4 = vld [vmem:[%s3120_s0 + $0x8] sm:$0xff] (!%p128_p3)  ;;  %v173_v6 = vld [vmem:[%s3120_s0 + $0x20] sm:$0xff] (!%p128_p3)  ;;  %v176_v7 = vld [vmem:[%s3120_s0 + $0x38] sm:$0xff] (!%p128_p3) }
   0x8   : > { %309 = vperm.xlu1 (!%p128_p3), %1955, %v171_v0   ;;  %299 = vperm.xlu0 (!%p128_p3), %1954, %v169_v1   ;;  %v174_v5 = vld [vmem:[%s3120_s0 + $0x28] sm:$0xff] (!%p128_p3)  ;;  %v175_v8 = vld [vmem:[%s3120_s0 + $0x30] sm:$0xff] (!%p128_p3)  ;;  %v177_v10 = vld [vmem:[%s3120_s0 + $0x40] sm:$0xff] (!%p128_p3) }
   0x9   : > { %v178_v9 = vld [vmem:[%s3120_s0 + $0x48] sm:$0xff] (!%p128_p3)  ;;  %v180_v11 = vld [vmem:[%s3120_s0 + $0x58] sm:$0xff] (!%p128_p3)  ;;  %v179_v12 = vld [vmem:[%s3120_s0 + $0x50] sm:$0xff] (!%p128_p3) }
   0xa   : > { %v182_v13 = vld [vmem:[%s3120_s0 + $0x68] sm:$0xff] (!%p128_p3)  ;;  %v181_v14 = vld [vmem:[%s3120_s0 + $0x60] sm:$0xff] (!%p128_p3)  ;;  %v184_v15 = vld [vmem:[%s3120_s0 + $0x78] sm:$0xff] (!%p128_p3) }
   0xb   : > { %v183_v16 = vld [vmem:[%s3120_s0 + $0x70] sm:$0xff] (!%p128_p3)  ;;  %v186_v17 = vld [vmem:[%s3120_s0 + $0x88] sm:$0xff] (!%p128_p3)  ;;  %v185_v18 = vld [vmem:[%s3120_s0 + $0x80] sm:$0xff] (!%p128_p3) }
   0xc   : > { %314 = vperm.xlu1 (!%p128_p3), %1955, %v172_v3   ;;  %304 = vperm.xlu0 (!%p128_p3), %1954, %v170_v4   ;;  %v188_v19 = vld [vmem:[%s3120_s0 + $0x98] sm:$0xff] (!%p128_p3)  ;;  %v187_v20 = vld [vmem:[%s3120_s0 + $0x90] sm:$0xff] (!%p128_p3)  ;;  %v190_v21 = vld [vmem:[%s3120_s0 + $0xa8] sm:$0xff] (!%p128_p3) }
   0xd   : > { %v189_v22 = vld [vmem:[%s3120_s0 + $0xa0] sm:$0xff] (!%p128_p3)  ;;  %v192_v23 = vld [vmem:[%s3120_s0 + $0xb8] sm:$0xff] (!%p128_p3)  ;;  %v191_v24 = vld [vmem:[%s3120_s0 + $0xb0] sm:$0xff] (!%p128_p3) }
   0xe   : > { %v194_v25 = vld [vmem:[%s3120_s0 + $0xc8] sm:$0xff]  ;;  %v193_v26 = vld [vmem:[%s3120_s0 + $0xc0] sm:$0xff]  ;;  %v196_v27 = vld [vmem:[%s3120_s0 + $0xd8] sm:$0xff]  ;;  %s3128_s9 = smov (!%p160_p4, %s1970_s9), 1 }
   0xf   : > { %v195_v28 = vld [vmem:[%s3120_s0 + $0xd0] sm:$0xff]  ;;  %v198_v29 = vld [vmem:[%s3120_s0 + $0xe8] sm:$0xff]  ;;  %v197_v30 = vld [vmem:[%s3120_s0 + $0xe0] sm:$0xff]  ;;  %s1928_s21 = sshll.u32 %s3128_s9, 11 }
  0x10   : > { %324 = vperm.xlu1 %1955, %v174_v5   ;;  %319 = vperm.xlu0 %1954, %v173_v6   ;;  %v200_v31 = vld [vmem:[%s3120_s0 + $0xf8] sm:$0xff]  ;;  %v199_v32 = vld [vmem:[%s3120_s0 + $0xf0] sm:$0xff]  ;;  %v202_v33 = vld [vmem:[%s3120_s0 + $0x108] sm:$0xff]  ;;  %s2213_s24 = scalar_lea.vmem %s3122_s2, %s1928_s21 }
  0x11   : > { %v201_v34 = vld [vmem:[%s3120_s0 + $0x100] sm:$0xff]  ;;  %v204_v35 = vld [vmem:[%s3120_s0 + $0x118] sm:$0xff]  ;;  %v203_v36 = vld [vmem:[%s3120_s0 + $0x110] sm:$0xff] }
  0x12   : > { %v206_v37 = vld [vmem:[%s3120_s0 + $0x128] sm:$0xff]  ;;  %v205_v38 = vld [vmem:[%s3120_s0 + $0x120] sm:$0xff]  ;;  %v208_v39 = vld [vmem:[%s3120_s0 + $0x138] sm:$0xff] }
  0x13   : > { %v207_v40 = vld [vmem:[%s3120_s0 + $0x130] sm:$0xff]  ;;  %v210_v41 = vld [vmem:[%s3120_s0 + $0x148] sm:$0xff]  ;;  %v209_v42 = vld [vmem:[%s3120_s0 + $0x140] sm:$0xff] }
  0x14   : > { %334 = vperm.xlu1 %1955, %v176_v7   ;;  %329 = vperm.xlu0 %1954, %v175_v8   ;;  %v212_v43 = vld [vmem:[%s3120_s0 + $0x158] sm:$0xff]  ;;  %v211_v44 = vld [vmem:[%s3120_s0 + $0x150] sm:$0xff]  ;;  %v214_v45 = vld [vmem:[%s3120_s0 + $0x168] sm:$0xff] }
  0x15   : > { %v213_v46 = vld [vmem:[%s3120_s0 + $0x160] sm:$0xff]  ;;  %v216_v47 = vld [vmem:[%s3120_s0 + $0x178] sm:$0xff]  ;;  %v215_v48 = vld [vmem:[%s3120_s0 + $0x170] sm:$0xff] }
  0x16   : > { %v218_v49 = vld [vmem:[%s3120_s0 + $0x188] sm:$0xff]  ;;  %v217_v50 = vld [vmem:[%s3120_s0 + $0x180] sm:$0xff]  ;;  %v220_v51 = vld [vmem:[%s3120_s0 + $0x198] sm:$0xff] }
  0x17   : > { %v219_v52 = vld [vmem:[%s3120_s0 + $0x190] sm:$0xff]  ;;  %v222_v53 = vld [vmem:[%s3120_s0 + $0x1a8] sm:$0xff]  ;;  %v221_v54 = vld [vmem:[%s3120_s0 + $0x1a0] sm:$0xff] }
  0x18   : > { %344 = vperm.xlu1 %1955, %v178_v9   ;;  %339 = vperm.xlu0 %1954, %v177_v10   ;;  %v224_v55 = vld [vmem:[%s3120_s0 + $0x1b8] sm:$0xff]  ;;  %v223_v56 = vld [vmem:[%s3120_s0 + $0x1b0] sm:$0xff]  ;;  %v226_v57 = vld [vmem:[%s3120_s0 + $0x1c8] sm:$0xff] }
  0x19   : > { %v225_v58 = vld [vmem:[%s3120_s0 + $0x1c0] sm:$0xff]  ;;  %v228_v59 = vld [vmem:[%s3120_s0 + $0x1d8] sm:$0xff]  ;;  %v227_v60 = vld [vmem:[%s3120_s0 + $0x1d0] sm:$0xff] }
  0x1a   : > { %v230_v61 = vld [vmem:[%s3120_s0 + $0x1e8] sm:$0xff]  ;;  %v229_v62 = vld [vmem:[%s3120_s0 + $0x1e0] sm:$0xff]  ;;  %v232_v63 = vld [vmem:[%s3120_s0 + $0x1f8] sm:$0xff] }
  0x1b   : > { %v231_v0 = vld [vmem:[%s3120_s0 + $0x1f0] sm:$0xff]  ;;  %v234_v1 = vld [vmem:[%s3120_s0 + $0x208] sm:$0xff]  ;;  %v233_v2 = vld [vmem:[%s3120_s0 + $0x200] sm:$0xff] }
  0x1c   : > { %354 = vperm.xlu1 %1955, %v180_v11   ;;  %349 = vperm.xlu0 %1954, %v179_v12   ;;  %v236_v5 = vld [vmem:[%s3120_s0 + $0x218] sm:$0xff]  ;;  %v235_v6 = vld [vmem:[%s3120_s0 + $0x210] sm:$0xff]  ;;  %v238_v9 = vld [vmem:[%s3120_s0 + $0x228] sm:$0xff] }
  0x1d   : > { %v237_v10 = vld [vmem:[%s3120_s0 + $0x220] sm:$0xff] }
  0x20   : > { %364 = vperm.xlu1 %1955, %v182_v13   ;;  %359 = vperm.xlu0 %1954, %v181_v14   ;;  %v240_v13 = vld [vmem:[%s3120_s0 + $0x238] sm:$0xff]  ;;  %v239_v14 = vld [vmem:[%s3120_s0 + $0x230] sm:$0xff] }
  0x24   : > { %374 = vperm.xlu1 %1955, %v184_v15   ;;  %369 = vperm.xlu0 %1954, %v183_v16  }
  0x28   : > { %384 = vperm.xlu1 %1955, %v186_v17   ;;  %379 = vperm.xlu0 %1954, %v185_v18   ;;  %v242_v17 = vld [vmem:[%s3120_s0 + $0x248] sm:$0xff]  ;;  %v241_v18 = vld [vmem:[%s3120_s0 + $0x240] sm:$0xff] }
  0x2c   : > { %394 = vperm.xlu1 %1955, %v188_v19   ;;  %389 = vperm.xlu0 %1954, %v187_v20  }
  0x30   : > { %404 = vperm.xlu1 %1955, %v190_v21   ;;  %399 = vperm.xlu0 %1954, %v189_v22   ;;  %v244_v21 = vld [vmem:[%s3120_s0 + $0x258] sm:$0xff]  ;;  %v243_v22 = vld [vmem:[%s3120_s0 + $0x250] sm:$0xff] }
  0x34   : > { %414 = vperm.xlu1 %1955, %v192_v23   ;;  %409 = vperm.xlu0 %1954, %v191_v24  }
  0x38   : > { %424 = vperm.xlu1 %1955, %v194_v25   ;;  %419 = vperm.xlu0 %1954, %v193_v26   ;;  %v246_v25 = vld [vmem:[%s3120_s0 + $0x268] sm:$0xff]  ;;  %v245_v26 = vld [vmem:[%s3120_s0 + $0x260] sm:$0xff] }
  0x3c   : > { %434 = vperm.xlu1 %1955, %v196_v27   ;;  %429 = vperm.xlu0 %1954, %v195_v28  }
  0x40   : > { %444 = vperm.xlu1 %1955, %v198_v29   ;;  %439 = vperm.xlu0 %1954, %v197_v30   ;;  %v248_v29 = vld [vmem:[%s3120_s0 + $0x278] sm:$0xff]  ;;  %v247_v30 = vld [vmem:[%s3120_s0 + $0x270] sm:$0xff] }
  0x44   : > { %454 = vperm.xlu1 %1955, %v200_v31   ;;  %449 = vperm.xlu0 %1954, %v199_v32  }
  0x48   : > { %464 = vperm.xlu1 %1955, %v202_v33   ;;  %459 = vperm.xlu0 %1954, %v201_v34   ;;  %v250_v33 = vld [vmem:[%s3120_s0 + $0x288] sm:$0xff]  ;;  %v249_v34 = vld [vmem:[%s3120_s0 + $0x280] sm:$0xff] }
  0x4c   : > { %474 = vperm.xlu1 %1955, %v204_v35   ;;  %469 = vperm.xlu0 %1954, %v203_v36  }
  0x50   : > { %484 = vperm.xlu1 %1955, %v206_v37   ;;  %479 = vperm.xlu0 %1954, %v205_v38   ;;  %v252_v37 = vld [vmem:[%s3120_s0 + $0x298] sm:$0xff]  ;;  %v251_v38 = vld [vmem:[%s3120_s0 + $0x290] sm:$0xff] }
  0x54   : > { %494 = vperm.xlu1 %1955, %v208_v39   ;;  %489 = vperm.xlu0 %1954, %v207_v40  }
  0x58   : > { %504 = vperm.xlu1 %1955, %v210_v41   ;;  %499 = vperm.xlu0 %1954, %v209_v42   ;;  %v254_v41 = vld [vmem:[%s3120_s0 + $0x2a8] sm:$0xff]  ;;  %v253_v42 = vld [vmem:[%s3120_s0 + $0x2a0] sm:$0xff] }
  0x5c   : > { %514 = vperm.xlu1 %1955, %v212_v43   ;;  %509 = vperm.xlu0 %1954, %v211_v44  }
  0x60   : > { %524 = vperm.xlu1 %1955, %v214_v45   ;;  %519 = vperm.xlu0 %1954, %v213_v46   ;;  %v256_v45 = vld [vmem:[%s3120_s0 + $0x2b8] sm:$0xff]  ;;  %v255_v46 = vld [vmem:[%s3120_s0 + $0x2b0] sm:$0xff] }
  0x64   : > { %534 = vperm.xlu1 %1955, %v216_v47   ;;  %529 = vperm.xlu0 %1954, %v215_v48  }
  0x68   : > { %544 = vperm.xlu1 %1955, %v218_v49   ;;  %539 = vperm.xlu0 %1954, %v217_v50   ;;  %v258_v49 = vld [vmem:[%s3120_s0 + $0x2c8] sm:$0xff]  ;;  %v257_v50 = vld [vmem:[%s3120_s0 + $0x2c0] sm:$0xff] }
  0x6c   : > { %554 = vperm.xlu1 %1955, %v220_v51   ;;  %549 = vperm.xlu0 %1954, %v219_v52  }
  0x70   : > { %564 = vperm.xlu1 %1955, %v222_v53   ;;  %559 = vperm.xlu0 %1954, %v221_v54   ;;  %v260_v53 = vld [vmem:[%s3120_s0 + $0x2d8] sm:$0xff]  ;;  %v259_v54 = vld [vmem:[%s3120_s0 + $0x2d0] sm:$0xff] }
  0x74   : > { %574 = vperm.xlu1 %1955, %v224_v55   ;;  %569 = vperm.xlu0 %1954, %v223_v56  }
  0x78   : > { %584 = vperm.xlu1 %1955, %v226_v57   ;;  %579 = vperm.xlu0 %1954, %v225_v58   ;;  %v262_v57 = vld [vmem:[%s3120_s0 + $0x2e8] sm:$0xff]  ;;  %v261_v58 = vld [vmem:[%s3120_s0 + $0x2e0] sm:$0xff] }
  0x7c   : > { %594 = vperm.xlu1 %1955, %v228_v59   ;;  %589 = vperm.xlu0 %1954, %v227_v60  }
  0x80   : > { %604 = vperm.xlu1 %1955, %v230_v61   ;;  %599 = vperm.xlu0 %1954, %v229_v62   ;;  %v264_v61 = vld [vmem:[%s3120_s0 + $0x2f8] sm:$0xff]  ;;  %v263_v62 = vld [vmem:[%s3120_s0 + $0x2f0] sm:$0xff] }
  0x84   : > { %614 = vperm.xlu1 %1955, %v232_v63   ;;  %609 = vperm.xlu0 %1954, %v231_v0  }
  0x87   : > { %v310_v3 = vpop.permute.xlu1 %309  ;;  %v300_v4 = vpop.permute.xlu0 %299 }
  0x88   : > { %940 = vst.msk [vmem:[%s2213_s24 + $0x10] sm:$0xff] %vm937_vm0, %v310_v3  ;;  %938 = vst.msk [vmem:[%s2213_s24] sm:$0xff] %vm937_vm0, %v300_v4  ;;  %624 = vperm.xlu1 %1955, %v234_v1   ;;  %619 = vperm.xlu0 %1954, %v233_v2   ;;  %v266_v1 = vld [vmem:[%s3120_s0 + $0x308] sm:$0xff]  ;;  %v265_v2 = vld [vmem:[%s3120_s0 + $0x300] sm:$0xff] }
  0x8b   : > { %v315_v7 = vpop.permute.xlu1 %314  ;;  %v305_v8 = vpop.permute.xlu0 %304 }
  0x8c   : > { %941 = vst.msk [vmem:[%s2213_s24 + $0x18] sm:$0xff] %vm937_vm0, %v315_v7  ;;  %939 = vst.msk [vmem:[%s2213_s24 + $0x8] sm:$0xff] %vm937_vm0, %v305_v8  ;;  %634 = vperm.xlu1 %1955, %v236_v5   ;;  %629 = vperm.xlu0 %1954, %v235_v6   ;;  %v268_v5 = vld [vmem:[%s3120_s0 + $0x318] sm:$0xff]  ;;  %v267_v6 = vld [vmem:[%s3120_s0 + $0x310] sm:$0xff] }
  0x8f   : > { %v325_v11 = vpop.permute.xlu1 %324  ;;  %v320_v12 = vpop.permute.xlu0 %319 }
  0x90   : > { %943 = vst.msk [vmem:[%s2213_s24 + $0x28] sm:$0xff] %vm937_vm0, %v325_v11  ;;  %942 = vst.msk [vmem:[%s2213_s24 + $0x20] sm:$0xff] %vm937_vm0, %v320_v12  ;;  %644 = vperm.xlu1 %1955, %v238_v9   ;;  %639 = vperm.xlu0 %1954, %v237_v10   ;;  %v270_v9 = vld [vmem:[%s3120_s0 + $0x328] sm:$0xff]  ;;  %v269_v10 = vld [vmem:[%s3120_s0 + $0x320] sm:$0xff] }
  0x93   : > { %v335_v15 = vpop.permute.xlu1 %334  ;;  %v330_v16 = vpop.permute.xlu0 %329 }
  0x94   : > { %945 = vst.msk [vmem:[%s2213_s24 + $0x38] sm:$0xff] %vm937_vm0, %v335_v15  ;;  %944 = vst.msk [vmem:[%s2213_s24 + $0x30] sm:$0xff] %vm937_vm0, %v330_v16  ;;  %654 = vperm.xlu1 %1955, %v240_v13   ;;  %649 = vperm.xlu0 %1954, %v239_v14   ;;  %v272_v13 = vld [vmem:[%s3120_s0 + $0x338] sm:$0xff]  ;;  %v271_v14 = vld [vmem:[%s3120_s0 + $0x330] sm:$0xff] }
  0x97   : > { %v345_v19 = vpop.permute.xlu1 %344  ;;  %v340_v20 = vpop.permute.xlu0 %339 }
  0x98   : > { %947 = vst.msk [vmem:[%s2213_s24 + $0x48] sm:$0xff] %vm937_vm0, %v345_v19  ;;  %946 = vst.msk [vmem:[%s2213_s24 + $0x40] sm:$0xff] %vm937_vm0, %v340_v20  ;;  %664 = vperm.xlu1 %1955, %v242_v17   ;;  %659 = vperm.xlu0 %1954, %v241_v18   ;;  %v274_v17 = vld [vmem:[%s3120_s0 + $0x348] sm:$0xff]  ;;  %v273_v18 = vld [vmem:[%s3120_s0 + $0x340] sm:$0xff] }
  0x9b   : > { %v355_v23 = vpop.permute.xlu1 %354  ;;  %v350_v24 = vpop.permute.xlu0 %349 }
  0x9c   : > { %949 = vst.msk [vmem:[%s2213_s24 + $0x58] sm:$0xff] %vm937_vm0, %v355_v23  ;;  %948 = vst.msk [vmem:[%s2213_s24 + $0x50] sm:$0xff] %vm937_vm0, %v350_v24  ;;  %674 = vperm.xlu1 %1955, %v244_v21   ;;  %669 = vperm.xlu0 %1954, %v243_v22   ;;  %v276_v21 = vld [vmem:[%s3120_s0 + $0x358] sm:$0xff]  ;;  %v275_v22 = vld [vmem:[%s3120_s0 + $0x350] sm:$0xff] }
  0x9f   : > { %v365_v27 = vpop.permute.xlu1 %364  ;;  %v360_v28 = vpop.permute.xlu0 %359 }
  0xa0   : > { %951 = vst.msk [vmem:[%s2213_s24 + $0x68] sm:$0xff] %vm937_vm0, %v365_v27  ;;  %950 = vst.msk [vmem:[%s2213_s24 + $0x60] sm:$0xff] %vm937_vm0, %v360_v28  ;;  %684 = vperm.xlu1 %1955, %v246_v25   ;;  %679 = vperm.xlu0 %1954, %v245_v26   ;;  %v278_v25 = vld [vmem:[%s3120_s0 + $0x368] sm:$0xff]  ;;  %v277_v26 = vld [vmem:[%s3120_s0 + $0x360] sm:$0xff] }
  0xa3   : > { %v375_v31 = vpop.permute.xlu1 %374  ;;  %v370_v32 = vpop.permute.xlu0 %369 }
  0xa4   : > { %953 = vst.msk [vmem:[%s2213_s24 + $0x78] sm:$0xff] %vm937_vm0, %v375_v31  ;;  %952 = vst.msk [vmem:[%s2213_s24 + $0x70] sm:$0xff] %vm937_vm0, %v370_v32  ;;  %694 = vperm.xlu1 %1955, %v248_v29   ;;  %689 = vperm.xlu0 %1954, %v247_v30   ;;  %v280_v29 = vld [vmem:[%s3120_s0 + $0x378] sm:$0xff]  ;;  %v279_v30 = vld [vmem:[%s3120_s0 + $0x370] sm:$0xff] }
  0xa7   : > { %v385_v35 = vpop.permute.xlu1 %384  ;;  %v380_v36 = vpop.permute.xlu0 %379 }
  0xa8   : > { %955 = vst.msk [vmem:[%s2213_s24 + $0x88] sm:$0xff] %vm937_vm0, %v385_v35  ;;  %954 = vst.msk [vmem:[%s2213_s24 + $0x80] sm:$0xff] %vm937_vm0, %v380_v36  ;;  %704 = vperm.xlu1 %1955, %v250_v33   ;;  %699 = vperm.xlu0 %1954, %v249_v34   ;;  %v282_v33 = vld [vmem:[%s3120_s0 + $0x388] sm:$0xff]  ;;  %v281_v34 = vld [vmem:[%s3120_s0 + $0x380] sm:$0xff] }
  0xab   : > { %v395_v39 = vpop.permute.xlu1 %394  ;;  %v390_v40 = vpop.permute.xlu0 %389 }
  0xac   : > { %957 = vst.msk [vmem:[%s2213_s24 + $0x98] sm:$0xff] %vm937_vm0, %v395_v39  ;;  %956 = vst.msk [vmem:[%s2213_s24 + $0x90] sm:$0xff] %vm937_vm0, %v390_v40  ;;  %714 = vperm.xlu1 %1955, %v252_v37   ;;  %709 = vperm.xlu0 %1954, %v251_v38   ;;  %v284_v37 = vld [vmem:[%s3120_s0 + $0x398] sm:$0xff]  ;;  %v283_v38 = vld [vmem:[%s3120_s0 + $0x390] sm:$0xff] }
  0xaf   : > { %v405_v43 = vpop.permute.xlu1 %404  ;;  %v400_v44 = vpop.permute.xlu0 %399 }
  0xb0   : > { %959 = vst.msk [vmem:[%s2213_s24 + $0xa8] sm:$0xff] %vm937_vm0, %v405_v43  ;;  %958 = vst.msk [vmem:[%s2213_s24 + $0xa0] sm:$0xff] %vm937_vm0, %v400_v44  ;;  %724 = vperm.xlu1 %1955, %v254_v41   ;;  %719 = vperm.xlu0 %1954, %v253_v42   ;;  %v286_v41 = vld [vmem:[%s3120_s0 + $0x3a8] sm:$0xff]  ;;  %v285_v42 = vld [vmem:[%s3120_s0 + $0x3a0] sm:$0xff] }
  0xb3   : > { %v415_v47 = vpop.permute.xlu1 %414  ;;  %v410_v48 = vpop.permute.xlu0 %409 }
  0xb4   : > { %961 = vst.msk [vmem:[%s2213_s24 + $0xb8] sm:$0xff] %vm937_vm0, %v415_v47  ;;  %960 = vst.msk [vmem:[%s2213_s24 + $0xb0] sm:$0xff] %vm937_vm0, %v410_v48  ;;  %734 = vperm.xlu1 %1955, %v256_v45   ;;  %729 = vperm.xlu0 %1954, %v255_v46   ;;  %v288_v45 = vld [vmem:[%s3120_s0 + $0x3b8] sm:$0xff]  ;;  %v287_v46 = vld [vmem:[%s3120_s0 + $0x3b0] sm:$0xff] }
  0xb7   : > { %v425_v51 = vpop.permute.xlu1 %424  ;;  %v420_v52 = vpop.permute.xlu0 %419 }
  0xb8   : > { %963 = vst.msk [vmem:[%s2213_s24 + $0xc8] sm:$0xff] %vm937_vm0, %v425_v51  ;;  %962 = vst.msk [vmem:[%s2213_s24 + $0xc0] sm:$0xff] %vm937_vm0, %v420_v52  ;;  %744 = vperm.xlu1 %1955, %v258_v49   ;;  %739 = vperm.xlu0 %1954, %v257_v50   ;;  %v290_v49 = vld [vmem:[%s3120_s0 + $0x3c8] sm:$0xff]  ;;  %v289_v50 = vld [vmem:[%s3120_s0 + $0x3c0] sm:$0xff] }
  0xbb   : > { %v435_v55 = vpop.permute.xlu1 %434  ;;  %v430_v56 = vpop.permute.xlu0 %429 }
  0xbc   : > { %965 = vst.msk [vmem:[%s2213_s24 + $0xd8] sm:$0xff] %vm937_vm0, %v435_v55  ;;  %964 = vst.msk [vmem:[%s2213_s24 + $0xd0] sm:$0xff] %vm937_vm0, %v430_v56  ;;  %754 = vperm.xlu1 %1955, %v260_v53   ;;  %749 = vperm.xlu0 %1954, %v259_v54   ;;  %v292_v53 = vld [vmem:[%s3120_s0 + $0x3d8] sm:$0xff]  ;;  %v291_v54 = vld [vmem:[%s3120_s0 + $0x3d0] sm:$0xff] }
  0xbf   : > { %v445_v59 = vpop.permute.xlu1 %444  ;;  %v440_v60 = vpop.permute.xlu0 %439 }
  0xc0   : > { %967 = vst.msk [vmem:[%s2213_s24 + $0xe8] sm:$0xff] %vm937_vm0, %v445_v59  ;;  %966 = vst.msk [vmem:[%s2213_s24 + $0xe0] sm:$0xff] %vm937_vm0, %v440_v60  ;;  %764 = vperm.xlu1 %1955, %v262_v57   ;;  %759 = vperm.xlu0 %1954, %v261_v58   ;;  %v294_v57 = vld [vmem:[%s3120_s0 + $0x3e8] sm:$0xff]  ;;  %v293_v58 = vld [vmem:[%s3120_s0 + $0x3e0] sm:$0xff] }
  0xc3   : > { %v455_v63 = vpop.permute.xlu1 %454  ;;  %v450_v0 = vpop.permute.xlu0 %449 }
  0xc4   : > { %969 = vst.msk [vmem:[%s2213_s24 + $0xf8] sm:$0xff] %vm937_vm0, %v455_v63  ;;  %968 = vst.msk [vmem:[%s2213_s24 + $0xf0] sm:$0xff] %vm937_vm0, %v450_v0  ;;  %774 = vperm.xlu1 %1955, %v264_v61   ;;  %769 = vperm.xlu0 %1954, %v263_v62   ;;  %v296_v61 = vld [vmem:[%s3120_s0 + $0x3f8] sm:$0xff]  ;;  %v295_v62 = vld [vmem:[%s3120_s0 + $0x3f0] sm:$0xff] }
  0xc7   : > { %v465_v3 = vpop.permute.xlu1 %464  ;;  %v460_v4 = vpop.permute.xlu0 %459 }
  0xc8   : > { %971 = vst.msk [vmem:[%s2213_s24 + $0x108] sm:$0xff] %vm937_vm0, %v465_v3  ;;  %970 = vst.msk [vmem:[%s2213_s24 + $0x100] sm:$0xff] %vm937_vm0, %v460_v4  ;;  %784 = vperm.xlu1 %1955, %v266_v1   ;;  %779 = vperm.xlu0 %1954, %v265_v2   ;;  %v1734_v1 = vld [vmem:[%s3121_s1] ss:$0 sm:$0xff]  ;;  %v1735_v2 = vld [vmem:[%s3121_s1 + $0x1] ss:$0 sm:$0xff] }
  0xc9   : > { %v1736_v3 = vld [vmem:[%s3121_s1 + $0x2] ss:$0 sm:$0xff]  ;;  %v1737_v4 = vld [vmem:[%s3121_s1 + $0x3] ss:$0 sm:$0xff]  ;;  %1798 = vst.msk [vmem:[%s2213_s24 + $0x400] sm:$0xff] %vm937_vm0, %v1734_v1  ;;  %1799 = vst.msk [vmem:[%s2213_s24 + $0x408] sm:$0xff] %vm937_vm0, %v1734_v1 }
  0xca   : > { %1800 = vst.msk [vmem:[%s2213_s24 + $0x410] sm:$0xff] %vm937_vm0, %v1735_v2  ;;  %1801 = vst.msk [vmem:[%s2213_s24 + $0x418] sm:$0xff] %vm937_vm0, %v1735_v2  ;;  %v1790_v1 = vld [vmem:[%s3121_s1 + $0x38] ss:$0 sm:$0xff]  ;;  %v1791_v2 = vld [vmem:[%s3121_s1 + $0x39] ss:$0 sm:$0xff] }
  0xcb   : > { %v475_v7 = vpop.permute.xlu1 %474  ;;  %v470_v8 = vpop.permute.xlu0 %469  ;;  %1802 = vst.msk [vmem:[%s2213_s24 + $0x420] sm:$0xff] %vm937_vm0, %v1736_v3  ;;  %1803 = vst.msk [vmem:[%s2213_s24 + $0x428] sm:$0xff] %vm937_vm0, %v1736_v3  ;;  %v1792_v3 = vld [vmem:[%s3121_s1 + $0x3a] ss:$0 sm:$0xff] }
  0xcc   : > { %973 = vst.msk [vmem:[%s2213_s24 + $0x118] sm:$0xff] %vm937_vm0, %v475_v7  ;;  %972 = vst.msk [vmem:[%s2213_s24 + $0x110] sm:$0xff] %vm937_vm0, %v470_v8  ;;  %794 = vperm.xlu1 %1955, %v268_v5   ;;  %789 = vperm.xlu0 %1954, %v267_v6   ;;  %v1738_v5 = vld [vmem:[%s3121_s1 + $0x4] ss:$0 sm:$0xff]  ;;  %v1739_v6 = vld [vmem:[%s3121_s1 + $0x5] ss:$0 sm:$0xff] }
  0xcd   : > { %v1740_v7 = vld [vmem:[%s3121_s1 + $0x6] ss:$0 sm:$0xff]  ;;  %v1741_v8 = vld [vmem:[%s3121_s1 + $0x7] ss:$0 sm:$0xff]  ;;  %1804 = vst.msk [vmem:[%s2213_s24 + $0x430] sm:$0xff] %vm937_vm0, %v1737_v4  ;;  %1805 = vst.msk [vmem:[%s2213_s24 + $0x438] sm:$0xff] %vm937_vm0, %v1737_v4 }
  0xce   : > { %1806 = vst.msk [vmem:[%s2213_s24 + $0x440] sm:$0xff] %vm937_vm0, %v1738_v5  ;;  %1807 = vst.msk [vmem:[%s2213_s24 + $0x448] sm:$0xff] %vm937_vm0, %v1738_v5  ;;  %v1793_v4 = vld [vmem:[%s3121_s1 + $0x3b] ss:$0 sm:$0xff] }
  0xcf   : > { %v485_v11 = vpop.permute.xlu1 %484  ;;  %v480_v12 = vpop.permute.xlu0 %479  ;;  %1808 = vst.msk [vmem:[%s2213_s24 + $0x450] sm:$0xff] %vm937_vm0, %v1739_v6  ;;  %1809 = vst.msk [vmem:[%s2213_s24 + $0x458] sm:$0xff] %vm937_vm0, %v1739_v6 }
  0xd0   : > { %975 = vst.msk [vmem:[%s2213_s24 + $0x128] sm:$0xff] %vm937_vm0, %v485_v11  ;;  %974 = vst.msk [vmem:[%s2213_s24 + $0x120] sm:$0xff] %vm937_vm0, %v480_v12  ;;  %804 = vperm.xlu1 %1955, %v270_v9   ;;  %799 = vperm.xlu0 %1954, %v269_v10   ;;  %v1742_v9 = vld [vmem:[%s3121_s1 + $0x8] ss:$0 sm:$0xff]  ;;  %v1743_v10 = vld [vmem:[%s3121_s1 + $0x9] ss:$0 sm:$0xff] }
  0xd1   : > { %v1744_v11 = vld [vmem:[%s3121_s1 + $0xa] ss:$0 sm:$0xff]  ;;  %v1745_v12 = vld [vmem:[%s3121_s1 + $0xb] ss:$0 sm:$0xff]  ;;  %1810 = vst.msk [vmem:[%s2213_s24 + $0x460] sm:$0xff] %vm937_vm0, %v1740_v7  ;;  %1811 = vst.msk [vmem:[%s2213_s24 + $0x468] sm:$0xff] %vm937_vm0, %v1740_v7 }
  0xd2   : > { %1812 = vst.msk [vmem:[%s2213_s24 + $0x470] sm:$0xff] %vm937_vm0, %v1741_v8  ;;  %1813 = vst.msk [vmem:[%s2213_s24 + $0x478] sm:$0xff] %vm937_vm0, %v1741_v8  ;;  %v1794_v7 = vld [vmem:[%s3121_s1 + $0x3c] ss:$0 sm:$0xff]  ;;  %v1795_v8 = vld [vmem:[%s3121_s1 + $0x3d] ss:$0 sm:$0xff] }
  0xd3   : > { %v495_v15 = vpop.permute.xlu1 %494  ;;  %v490_v16 = vpop.permute.xlu0 %489  ;;  %1814 = vst.msk [vmem:[%s2213_s24 + $0x480] sm:$0xff] %vm937_vm0, %v1742_v9  ;;  %1815 = vst.msk [vmem:[%s2213_s24 + $0x488] sm:$0xff] %vm937_vm0, %v1742_v9  ;;  %v1796_v9 = vld [vmem:[%s3121_s1 + $0x3e] ss:$0 sm:$0xff] }
  0xd4   : > { %977 = vst.msk [vmem:[%s2213_s24 + $0x138] sm:$0xff] %vm937_vm0, %v495_v15  ;;  %976 = vst.msk [vmem:[%s2213_s24 + $0x130] sm:$0xff] %vm937_vm0, %v490_v16  ;;  %814 = vperm.xlu1 %1955, %v272_v13   ;;  %809 = vperm.xlu0 %1954, %v271_v14   ;;  %v1746_v15 = vld [vmem:[%s3121_s1 + $0xc] ss:$0 sm:$0xff]  ;;  %v1747_v16 = vld [vmem:[%s3121_s1 + $0xd] ss:$0 sm:$0xff] }
  0xd5   : > { %1816 = vst.msk [vmem:[%s2213_s24 + $0x490] sm:$0xff] %vm937_vm0, %v1743_v10  ;;  %1817 = vst.msk [vmem:[%s2213_s24 + $0x498] sm:$0xff] %vm937_vm0, %v1743_v10  ;;  %v1797_v10 = vld [vmem:[%s3121_s1 + $0x3f] ss:$0 sm:$0xff] }
  0xd6   : > { %1818 = vst.msk [vmem:[%s2213_s24 + $0x4a0] sm:$0xff] %vm937_vm0, %v1744_v11  ;;  %1819 = vst.msk [vmem:[%s2213_s24 + $0x4a8] sm:$0xff] %vm937_vm0, %v1744_v11 }
  0xd7   : > { %v505_v19 = vpop.permute.xlu1 %504  ;;  %v500_v20 = vpop.permute.xlu0 %499  ;;  %1820 = vst.msk [vmem:[%s2213_s24 + $0x4b0] sm:$0xff] %vm937_vm0, %v1745_v12  ;;  %1821 = vst.msk [vmem:[%s2213_s24 + $0x4b8] sm:$0xff] %vm937_vm0, %v1745_v12 }
  0xd8   : > { %979 = vst.msk [vmem:[%s2213_s24 + $0x148] sm:$0xff] %vm937_vm0, %v505_v19  ;;  %978 = vst.msk [vmem:[%s2213_s24 + $0x140] sm:$0xff] %vm937_vm0, %v500_v20  ;;  %824 = vperm.xlu1 %1955, %v274_v17   ;;  %819 = vperm.xlu0 %1954, %v273_v18   ;;  %v1748_v17 = vld [vmem:[%s3121_s1 + $0xe] ss:$0 sm:$0xff]  ;;  %v1749_v18 = vld [vmem:[%s3121_s1 + $0xf] ss:$0 sm:$0xff] }
  0xd9   : > { %v1750_v19 = vld [vmem:[%s3121_s1 + $0x10] ss:$0 sm:$0xff]  ;;  %v1751_v20 = vld [vmem:[%s3121_s1 + $0x11] ss:$0 sm:$0xff]  ;;  %1822 = vst.msk [vmem:[%s2213_s24 + $0x4c0] sm:$0xff] %vm937_vm0, %v1746_v15  ;;  %1823 = vst.msk [vmem:[%s2213_s24 + $0x4c8] sm:$0xff] %vm937_vm0, %v1746_v15 }
  0xda   : > { %1824 = vst.msk [vmem:[%s2213_s24 + $0x4d0] sm:$0xff] %vm937_vm0, %v1747_v16  ;;  %1825 = vst.msk [vmem:[%s2213_s24 + $0x4d8] sm:$0xff] %vm937_vm0, %v1747_v16 }
  0xdb   : > { %v515_v23 = vpop.permute.xlu1 %514  ;;  %v510_v24 = vpop.permute.xlu0 %509  ;;  %1826 = vst.msk [vmem:[%s2213_s24 + $0x4e0] sm:$0xff] %vm937_vm0, %v1748_v17  ;;  %1827 = vst.msk [vmem:[%s2213_s24 + $0x4e8] sm:$0xff] %vm937_vm0, %v1748_v17 }
  0xdc   : > { %981 = vst.msk [vmem:[%s2213_s24 + $0x158] sm:$0xff] %vm937_vm0, %v515_v23  ;;  %980 = vst.msk [vmem:[%s2213_s24 + $0x150] sm:$0xff] %vm937_vm0, %v510_v24  ;;  %834 = vperm.xlu1 %1955, %v276_v21   ;;  %829 = vperm.xlu0 %1954, %v275_v22   ;;  %v1752_v21 = vld [vmem:[%s3121_s1 + $0x12] ss:$0 sm:$0xff]  ;;  %v1753_v22 = vld [vmem:[%s3121_s1 + $0x13] ss:$0 sm:$0xff] }
  0xdd   : > { %v1754_v23 = vld [vmem:[%s3121_s1 + $0x14] ss:$0 sm:$0xff]  ;;  %1828 = vst.msk [vmem:[%s2213_s24 + $0x4f0] sm:$0xff] %vm937_vm0, %v1749_v18  ;;  %1829 = vst.msk [vmem:[%s2213_s24 + $0x4f8] sm:$0xff] %vm937_vm0, %v1749_v18  ;;  %v1755_v24 = vld [vmem:[%s3121_s1 + $0x15] ss:$0 sm:$0xff] }
  0xde   : > { %1830 = vst.msk [vmem:[%s2213_s24 + $0x500] sm:$0xff] %vm937_vm0, %v1750_v19  ;;  %1831 = vst.msk [vmem:[%s2213_s24 + $0x508] sm:$0xff] %vm937_vm0, %v1750_v19 }
  0xdf   : > { %v525_v27 = vpop.permute.xlu1 %524  ;;  %v520_v28 = vpop.permute.xlu0 %519  ;;  %1832 = vst.msk [vmem:[%s2213_s24 + $0x510] sm:$0xff] %vm937_vm0, %v1751_v20  ;;  %1833 = vst.msk [vmem:[%s2213_s24 + $0x518] sm:$0xff] %vm937_vm0, %v1751_v20 }
  0xe0   : > { %983 = vst.msk [vmem:[%s2213_s24 + $0x168] sm:$0xff] %vm937_vm0, %v525_v27  ;;  %982 = vst.msk [vmem:[%s2213_s24 + $0x160] sm:$0xff] %vm937_vm0, %v520_v28  ;;  %844 = vperm.xlu1 %1955, %v278_v25   ;;  %839 = vperm.xlu0 %1954, %v277_v26   ;;  %v1756_v25 = vld [vmem:[%s3121_s1 + $0x16] ss:$0 sm:$0xff]  ;;  %v1757_v26 = vld [vmem:[%s3121_s1 + $0x17] ss:$0 sm:$0xff] }
  0xe1   : > { %1834 = vst.msk [vmem:[%s2213_s24 + $0x520] sm:$0xff] %vm937_vm0, %v1752_v21  ;;  %1835 = vst.msk [vmem:[%s2213_s24 + $0x528] sm:$0xff] %vm937_vm0, %v1752_v21 }
  0xe2   : > { %1836 = vst.msk [vmem:[%s2213_s24 + $0x530] sm:$0xff] %vm937_vm0, %v1753_v22  ;;  %1837 = vst.msk [vmem:[%s2213_s24 + $0x538] sm:$0xff] %vm937_vm0, %v1753_v22 }
  0xe3   : > { %v535_v31 = vpop.permute.xlu1 %534  ;;  %v530_v32 = vpop.permute.xlu0 %529  ;;  %1838 = vst.msk [vmem:[%s2213_s24 + $0x540] sm:$0xff] %vm937_vm0, %v1754_v23  ;;  %1839 = vst.msk [vmem:[%s2213_s24 + $0x548] sm:$0xff] %vm937_vm0, %v1754_v23 }
  0xe4   : > { %985 = vst.msk [vmem:[%s2213_s24 + $0x178] sm:$0xff] %vm937_vm0, %v535_v31  ;;  %984 = vst.msk [vmem:[%s2213_s24 + $0x170] sm:$0xff] %vm937_vm0, %v530_v32  ;;  %854 = vperm.xlu1 %1955, %v280_v29   ;;  %849 = vperm.xlu0 %1954, %v279_v30   ;;  %v1758_v29 = vld [vmem:[%s3121_s1 + $0x18] ss:$0 sm:$0xff]  ;;  %v1759_v30 = vld [vmem:[%s3121_s1 + $0x19] ss:$0 sm:$0xff] }
  0xe5   : > { %v1760_v31 = vld [vmem:[%s3121_s1 + $0x1a] ss:$0 sm:$0xff]  ;;  %1840 = vst.msk [vmem:[%s2213_s24 + $0x550] sm:$0xff] %vm937_vm0, %v1755_v24  ;;  %1841 = vst.msk [vmem:[%s2213_s24 + $0x558] sm:$0xff] %vm937_vm0, %v1755_v24  ;;  %v1761_v32 = vld [vmem:[%s3121_s1 + $0x1b] ss:$0 sm:$0xff] }
  0xe6   : > { %1842 = vst.msk [vmem:[%s2213_s24 + $0x560] sm:$0xff] %vm937_vm0, %v1756_v25  ;;  %1843 = vst.msk [vmem:[%s2213_s24 + $0x568] sm:$0xff] %vm937_vm0, %v1756_v25 }
  0xe7   : > { %v545_v35 = vpop.permute.xlu1 %544  ;;  %v540_v36 = vpop.permute.xlu0 %539  ;;  %1844 = vst.msk [vmem:[%s2213_s24 + $0x570] sm:$0xff] %vm937_vm0, %v1757_v26  ;;  %1845 = vst.msk [vmem:[%s2213_s24 + $0x578] sm:$0xff] %vm937_vm0, %v1757_v26 }
  0xe8   : > { %987 = vst.msk [vmem:[%s2213_s24 + $0x188] sm:$0xff] %vm937_vm0, %v545_v35  ;;  %986 = vst.msk [vmem:[%s2213_s24 + $0x180] sm:$0xff] %vm937_vm0, %v540_v36  ;;  %864 = vperm.xlu1 %1955, %v282_v33   ;;  %859 = vperm.xlu0 %1954, %v281_v34   ;;  %v1762_v33 = vld [vmem:[%s3121_s1 + $0x1c] ss:$0 sm:$0xff]  ;;  %v1763_v34 = vld [vmem:[%s3121_s1 + $0x1d] ss:$0 sm:$0xff] }
  0xe9   : > { %1846 = vst.msk [vmem:[%s2213_s24 + $0x580] sm:$0xff] %vm937_vm0, %v1758_v29  ;;  %1847 = vst.msk [vmem:[%s2213_s24 + $0x588] sm:$0xff] %vm937_vm0, %v1758_v29  ;;  %v1764_v35 = vld [vmem:[%s3121_s1 + $0x1e] ss:$0 sm:$0xff]  ;;  %v1765_v36 = vld [vmem:[%s3121_s1 + $0x1f] ss:$0 sm:$0xff] }
  0xea   : > { %1848 = vst.msk [vmem:[%s2213_s24 + $0x590] sm:$0xff] %vm937_vm0, %v1759_v30  ;;  %1849 = vst.msk [vmem:[%s2213_s24 + $0x598] sm:$0xff] %vm937_vm0, %v1759_v30 }
  0xeb   : > { %v555_v39 = vpop.permute.xlu1 %554  ;;  %v550_v40 = vpop.permute.xlu0 %549  ;;  %1850 = vst.msk [vmem:[%s2213_s24 + $0x5a0] sm:$0xff] %vm937_vm0, %v1760_v31  ;;  %1851 = vst.msk [vmem:[%s2213_s24 + $0x5a8] sm:$0xff] %vm937_vm0, %v1760_v31 }
  0xec   : > { %989 = vst.msk [vmem:[%s2213_s24 + $0x198] sm:$0xff] %vm937_vm0, %v555_v39  ;;  %988 = vst.msk [vmem:[%s2213_s24 + $0x190] sm:$0xff] %vm937_vm0, %v550_v40  ;;  %874 = vperm.xlu1 %1955, %v284_v37   ;;  %869 = vperm.xlu0 %1954, %v283_v38   ;;  %v1766_v37 = vld [vmem:[%s3121_s1 + $0x20] ss:$0 sm:$0xff]  ;;  %v1767_v38 = vld [vmem:[%s3121_s1 + $0x21] ss:$0 sm:$0xff] }
  0xed   : > { %1852 = vst.msk [vmem:[%s2213_s24 + $0x5b0] sm:$0xff] %vm937_vm0, %v1761_v32  ;;  %1853 = vst.msk [vmem:[%s2213_s24 + $0x5b8] sm:$0xff] %vm937_vm0, %v1761_v32  ;;  %v1768_v39 = vld [vmem:[%s3121_s1 + $0x22] ss:$0 sm:$0xff]  ;;  %v1769_v40 = vld [vmem:[%s3121_s1 + $0x23] ss:$0 sm:$0xff] }
  0xee   : > { %1854 = vst.msk [vmem:[%s2213_s24 + $0x5c0] sm:$0xff] %vm937_vm0, %v1762_v33  ;;  %1855 = vst.msk [vmem:[%s2213_s24 + $0x5c8] sm:$0xff] %vm937_vm0, %v1762_v33 }
  0xef   : > { %v565_v43 = vpop.permute.xlu1 %564  ;;  %v560_v44 = vpop.permute.xlu0 %559  ;;  %1856 = vst.msk [vmem:[%s2213_s24 + $0x5d0] sm:$0xff] %vm937_vm0, %v1763_v34  ;;  %1857 = vst.msk [vmem:[%s2213_s24 + $0x5d8] sm:$0xff] %vm937_vm0, %v1763_v34 }
  0xf0   : > { %991 = vst.msk [vmem:[%s2213_s24 + $0x1a8] sm:$0xff] %vm937_vm0, %v565_v43  ;;  %990 = vst.msk [vmem:[%s2213_s24 + $0x1a0] sm:$0xff] %vm937_vm0, %v560_v44  ;;  %884 = vperm.xlu1 %1955, %v286_v41   ;;  %879 = vperm.xlu0 %1954, %v285_v42   ;;  %v1770_v43 = vld [vmem:[%s3121_s1 + $0x24] ss:$0 sm:$0xff]  ;;  %v1771_v44 = vld [vmem:[%s3121_s1 + $0x25] ss:$0 sm:$0xff] }
  0xf1   : > { %1858 = vst.msk [vmem:[%s2213_s24 + $0x5e0] sm:$0xff] %vm937_vm0, %v1764_v35  ;;  %1859 = vst.msk [vmem:[%s2213_s24 + $0x5e8] sm:$0xff] %vm937_vm0, %v1764_v35 }
  0xf2   : > { %1860 = vst.msk [vmem:[%s2213_s24 + $0x5f0] sm:$0xff] %vm937_vm0, %v1765_v36  ;;  %1861 = vst.msk [vmem:[%s2213_s24 + $0x5f8] sm:$0xff] %vm937_vm0, %v1765_v36 }
  0xf3   : > { %v575_v47 = vpop.permute.xlu1 %574  ;;  %v570_v48 = vpop.permute.xlu0 %569  ;;  %1862 = vst.msk [vmem:[%s2213_s24 + $0x600] sm:$0xff] %vm937_vm0, %v1766_v37  ;;  %1863 = vst.msk [vmem:[%s2213_s24 + $0x608] sm:$0xff] %vm937_vm0, %v1766_v37 }
  0xf4   : > { %993 = vst.msk [vmem:[%s2213_s24 + $0x1b8] sm:$0xff] %vm937_vm0, %v575_v47  ;;  %992 = vst.msk [vmem:[%s2213_s24 + $0x1b0] sm:$0xff] %vm937_vm0, %v570_v48  ;;  %894 = vperm.xlu1 %1955, %v288_v45   ;;  %889 = vperm.xlu0 %1954, %v287_v46   ;;  %v1772_v45 = vld [vmem:[%s3121_s1 + $0x26] ss:$0 sm:$0xff]  ;;  %v1773_v46 = vld [vmem:[%s3121_s1 + $0x27] ss:$0 sm:$0xff] }
  0xf5   : > { %1864 = vst.msk [vmem:[%s2213_s24 + $0x610] sm:$0xff] %vm937_vm0, %v1767_v38  ;;  %1865 = vst.msk [vmem:[%s2213_s24 + $0x618] sm:$0xff] %vm937_vm0, %v1767_v38  ;;  %v1774_v47 = vld [vmem:[%s3121_s1 + $0x28] ss:$0 sm:$0xff]  ;;  %v1775_v48 = vld [vmem:[%s3121_s1 + $0x29] ss:$0 sm:$0xff] }
  0xf6   : > { %1866 = vst.msk [vmem:[%s2213_s24 + $0x620] sm:$0xff] %vm937_vm0, %v1768_v39  ;;  %1867 = vst.msk [vmem:[%s2213_s24 + $0x628] sm:$0xff] %vm937_vm0, %v1768_v39 }
  0xf7   : > { %v585_v51 = vpop.permute.xlu1 %584  ;;  %v580_v52 = vpop.permute.xlu0 %579  ;;  %1868 = vst.msk [vmem:[%s2213_s24 + $0x630] sm:$0xff] %vm937_vm0, %v1769_v40  ;;  %1869 = vst.msk [vmem:[%s2213_s24 + $0x638] sm:$0xff] %vm937_vm0, %v1769_v40 }
  0xf8   : > { %995 = vst.msk [vmem:[%s2213_s24 + $0x1c8] sm:$0xff] %vm937_vm0, %v585_v51  ;;  %994 = vst.msk [vmem:[%s2213_s24 + $0x1c0] sm:$0xff] %vm937_vm0, %v580_v52  ;;  %904 = vperm.xlu1 %1955, %v290_v49   ;;  %899 = vperm.xlu0 %1954, %v289_v50   ;;  %v1776_v49 = vld [vmem:[%s3121_s1 + $0x2a] ss:$0 sm:$0xff]  ;;  %v1777_v50 = vld [vmem:[%s3121_s1 + $0x2b] ss:$0 sm:$0xff] }
  0xf9   : > { %1870 = vst.msk [vmem:[%s2213_s24 + $0x640] sm:$0xff] %vm937_vm0, %v1770_v43  ;;  %1871 = vst.msk [vmem:[%s2213_s24 + $0x648] sm:$0xff] %vm937_vm0, %v1770_v43  ;;  %v1778_v51 = vld [vmem:[%s3121_s1 + $0x2c] ss:$0 sm:$0xff]  ;;  %v1779_v52 = vld [vmem:[%s3121_s1 + $0x2d] ss:$0 sm:$0xff] }
  0xfa   : > { %1872 = vst.msk [vmem:[%s2213_s24 + $0x650] sm:$0xff] %vm937_vm0, %v1771_v44  ;;  %1873 = vst.msk [vmem:[%s2213_s24 + $0x658] sm:$0xff] %vm937_vm0, %v1771_v44 }
  0xfb   : > { %v595_v55 = vpop.permute.xlu1 %594  ;;  %v590_v56 = vpop.permute.xlu0 %589  ;;  %1874 = vst.msk [vmem:[%s2213_s24 + $0x660] sm:$0xff] %vm937_vm0, %v1772_v45  ;;  %1875 = vst.msk [vmem:[%s2213_s24 + $0x668] sm:$0xff] %vm937_vm0, %v1772_v45 }
  0xfc   : > { %997 = vst.msk [vmem:[%s2213_s24 + $0x1d8] sm:$0xff] %vm937_vm0, %v595_v55  ;;  %996 = vst.msk [vmem:[%s2213_s24 + $0x1d0] sm:$0xff] %vm937_vm0, %v590_v56  ;;  %914 = vperm.xlu1 %1955, %v292_v53   ;;  %909 = vperm.xlu0 %1954, %v291_v54   ;;  %v1780_v53 = vld [vmem:[%s3121_s1 + $0x2e] ss:$0 sm:$0xff]  ;;  %v1781_v54 = vld [vmem:[%s3121_s1 + $0x2f] ss:$0 sm:$0xff] }
  0xfd   : > { %1876 = vst.msk [vmem:[%s2213_s24 + $0x670] sm:$0xff] %vm937_vm0, %v1773_v46  ;;  %1877 = vst.msk [vmem:[%s2213_s24 + $0x678] sm:$0xff] %vm937_vm0, %v1773_v46 }
  0xfe   : > { %1878 = vst.msk [vmem:[%s2213_s24 + $0x680] sm:$0xff] %vm937_vm0, %v1774_v47  ;;  %1879 = vst.msk [vmem:[%s2213_s24 + $0x688] sm:$0xff] %vm937_vm0, %v1774_v47 }
  0xff   : > { %v605_v59 = vpop.permute.xlu1 %604  ;;  %v600_v60 = vpop.permute.xlu0 %599  ;;  %1880 = vst.msk [vmem:[%s2213_s24 + $0x690] sm:$0xff] %vm937_vm0, %v1775_v48  ;;  %1881 = vst.msk [vmem:[%s2213_s24 + $0x698] sm:$0xff] %vm937_vm0, %v1775_v48 }
 0x100   : > { %999 = vst.msk [vmem:[%s2213_s24 + $0x1e8] sm:$0xff] %vm937_vm0, %v605_v59  ;;  %998 = vst.msk [vmem:[%s2213_s24 + $0x1e0] sm:$0xff] %vm937_vm0, %v600_v60  ;;  %924 = vperm.xlu1 %1955, %v294_v57   ;;  %919 = vperm.xlu0 %1954, %v293_v58   ;;  %v1782_v57 = vld [vmem:[%s3121_s1 + $0x30] ss:$0 sm:$0xff]  ;;  %v1783_v58 = vld [vmem:[%s3121_s1 + $0x31] ss:$0 sm:$0xff] }
 0x101   : > { %1882 = vst.msk [vmem:[%s2213_s24 + $0x6a0] sm:$0xff] %vm937_vm0, %v1776_v49  ;;  %1883 = vst.msk [vmem:[%s2213_s24 + $0x6a8] sm:$0xff] %vm937_vm0, %v1776_v49  ;;  %v1784_v59 = vld [vmem:[%s3121_s1 + $0x32] ss:$0 sm:$0xff]  ;;  %v1785_v60 = vld [vmem:[%s3121_s1 + $0x33] ss:$0 sm:$0xff] }
 0x102   : > { %1884 = vst.msk [vmem:[%s2213_s24 + $0x6b0] sm:$0xff] %vm937_vm0, %v1777_v50  ;;  %1885 = vst.msk [vmem:[%s2213_s24 + $0x6b8] sm:$0xff] %vm937_vm0, %v1777_v50 }
 0x103   : > { %v615_v63 = vpop.permute.xlu1 %614  ;;  %v610_v0 = vpop.permute.xlu0 %609  ;;  %1886 = vst.msk [vmem:[%s2213_s24 + $0x6c0] sm:$0xff] %vm937_vm0, %v1778_v51  ;;  %1887 = vst.msk [vmem:[%s2213_s24 + $0x6c8] sm:$0xff] %vm937_vm0, %v1778_v51 }
 0x104   : > { %1001 = vst.msk [vmem:[%s2213_s24 + $0x1f8] sm:$0xff] %vm937_vm0, %v615_v63  ;;  %1000 = vst.msk [vmem:[%s2213_s24 + $0x1f0] sm:$0xff] %vm937_vm0, %v610_v0  ;;  %934 = vperm.xlu1 %1955, %v296_v61   ;;  %929 = vperm.xlu0 %1954, %v295_v62   ;;  %v1786_v61 = vld [vmem:[%s3121_s1 + $0x34] ss:$0 sm:$0xff]  ;;  %v1787_v62 = vld [vmem:[%s3121_s1 + $0x35] ss:$0 sm:$0xff] }
 0x105   : > { %1888 = vst.msk [vmem:[%s2213_s24 + $0x6d0] sm:$0xff] %vm937_vm0, %v1779_v52  ;;  %1889 = vst.msk [vmem:[%s2213_s24 + $0x6d8] sm:$0xff] %vm937_vm0, %v1779_v52  ;;  %v1788_v63 = vld [vmem:[%s3121_s1 + $0x36] ss:$0 sm:$0xff]  ;;  %v1789_v0 = vld [vmem:[%s3121_s1 + $0x37] ss:$0 sm:$0xff] }
 0x106   : > { %1890 = vst.msk [vmem:[%s2213_s24 + $0x6e0] sm:$0xff] %vm937_vm0, %v1780_v53  ;;  %1891 = vst.msk [vmem:[%s2213_s24 + $0x6e8] sm:$0xff] %vm937_vm0, %v1780_v53 }
 0x107   : > { %v625_v13 = vpop.permute.xlu1 %624  ;;  %v620_v14 = vpop.permute.xlu0 %619  ;;  %1892 = vst.msk [vmem:[%s2213_s24 + $0x6f0] sm:$0xff] %vm937_vm0, %v1781_v54  ;;  %1893 = vst.msk [vmem:[%s2213_s24 + $0x6f8] sm:$0xff] %vm937_vm0, %v1781_v54 }
 0x108   : > { %1003 = vst.msk [vmem:[%s2213_s24 + $0x208] sm:$0xff] %vm937_vm0, %v625_v13  ;;  %1002 = vst.msk [vmem:[%s2213_s24 + $0x200] sm:$0xff] %vm937_vm0, %v620_v14 }
 0x109   : > { %1894 = vst.msk [vmem:[%s2213_s24 + $0x700] sm:$0xff] %vm937_vm0, %v1782_v57  ;;  %1895 = vst.msk [vmem:[%s2213_s24 + $0x708] sm:$0xff] %vm937_vm0, %v1782_v57 }
 0x10a   : > { %1896 = vst.msk [vmem:[%s2213_s24 + $0x710] sm:$0xff] %vm937_vm0, %v1783_v58  ;;  %1897 = vst.msk [vmem:[%s2213_s24 + $0x718] sm:$0xff] %vm937_vm0, %v1783_v58 }
 0x10b   : > { %v635_v27 = vpop.permute.xlu1 %634  ;;  %v630_v28 = vpop.permute.xlu0 %629  ;;  %1898 = vst.msk [vmem:[%s2213_s24 + $0x720] sm:$0xff] %vm937_vm0, %v1784_v59  ;;  %1899 = vst.msk [vmem:[%s2213_s24 + $0x728] sm:$0xff] %vm937_vm0, %v1784_v59 }
 0x10c   : > { %1005 = vst.msk [vmem:[%s2213_s24 + $0x218] sm:$0xff] %vm937_vm0, %v635_v27  ;;  %1004 = vst.msk [vmem:[%s2213_s24 + $0x210] sm:$0xff] %vm937_vm0, %v630_v28 }
 0x10d   : > { %1900 = vst.msk [vmem:[%s2213_s24 + $0x730] sm:$0xff] %vm937_vm0, %v1785_v60  ;;  %1901 = vst.msk [vmem:[%s2213_s24 + $0x738] sm:$0xff] %vm937_vm0, %v1785_v60 }
 0x10e   : > { %1902 = vst.msk [vmem:[%s2213_s24 + $0x740] sm:$0xff] %vm937_vm0, %v1786_v61  ;;  %1903 = vst.msk [vmem:[%s2213_s24 + $0x748] sm:$0xff] %vm937_vm0, %v1786_v61 }
 0x10f   : > { %v645_v41 = vpop.permute.xlu1 %644  ;;  %v640_v42 = vpop.permute.xlu0 %639  ;;  %1904 = vst.msk [vmem:[%s2213_s24 + $0x750] sm:$0xff] %vm937_vm0, %v1787_v62  ;;  %1905 = vst.msk [vmem:[%s2213_s24 + $0x758] sm:$0xff] %vm937_vm0, %v1787_v62 }
 0x110   : > { %1007 = vst.msk [vmem:[%s2213_s24 + $0x228] sm:$0xff] %vm937_vm0, %v645_v41  ;;  %1006 = vst.msk [vmem:[%s2213_s24 + $0x220] sm:$0xff] %vm937_vm0, %v640_v42 }
 0x111   : > { %1906 = vst.msk [vmem:[%s2213_s24 + $0x760] sm:$0xff] %vm937_vm0, %v1788_v63  ;;  %1907 = vst.msk [vmem:[%s2213_s24 + $0x768] sm:$0xff] %vm937_vm0, %v1788_v63 }
 0x112   : > { %1908 = vst.msk [vmem:[%s2213_s24 + $0x770] sm:$0xff] %vm937_vm0, %v1789_v0  ;;  %1909 = vst.msk [vmem:[%s2213_s24 + $0x778] sm:$0xff] %vm937_vm0, %v1789_v0 }
 0x113   : > { %v655_v55 = vpop.permute.xlu1 %654  ;;  %v650_v56 = vpop.permute.xlu0 %649  ;;  %1910 = vst.msk [vmem:[%s2213_s24 + $0x780] sm:$0xff] %vm937_vm0, %v1790_v1  ;;  %1911 = vst.msk [vmem:[%s2213_s24 + $0x788] sm:$0xff] %vm937_vm0, %v1790_v1 }
 0x114   : > { %1009 = vst.msk [vmem:[%s2213_s24 + $0x238] sm:$0xff] %vm937_vm0, %v655_v55  ;;  %1008 = vst.msk [vmem:[%s2213_s24 + $0x230] sm:$0xff] %vm937_vm0, %v650_v56 }
 0x115   : > { %1912 = vst.msk [vmem:[%s2213_s24 + $0x790] sm:$0xff] %vm937_vm0, %v1791_v2  ;;  %1913 = vst.msk [vmem:[%s2213_s24 + $0x798] sm:$0xff] %vm937_vm0, %v1791_v2 }
 0x116   : > { %1914 = vst.msk [vmem:[%s2213_s24 + $0x7a0] sm:$0xff] %vm937_vm0, %v1792_v3  ;;  %1915 = vst.msk [vmem:[%s2213_s24 + $0x7a8] sm:$0xff] %vm937_vm0, %v1792_v3 }
 0x117   : > { %v665_v5 = vpop.permute.xlu1 %664  ;;  %v660_v6 = vpop.permute.xlu0 %659  ;;  %1916 = vst.msk [vmem:[%s2213_s24 + $0x7b0] sm:$0xff] %vm937_vm0, %v1793_v4  ;;  %1917 = vst.msk [vmem:[%s2213_s24 + $0x7b8] sm:$0xff] %vm937_vm0, %v1793_v4 }
 0x118   : > { %1011 = vst.msk [vmem:[%s2213_s24 + $0x248] sm:$0xff] %vm937_vm0, %v665_v5  ;;  %1010 = vst.msk [vmem:[%s2213_s24 + $0x240] sm:$0xff] %vm937_vm0, %v660_v6 }
 0x119   : > { %1918 = vst.msk [vmem:[%s2213_s24 + $0x7c0] sm:$0xff] %vm937_vm0, %v1794_v7  ;;  %1919 = vst.msk [vmem:[%s2213_s24 + $0x7c8] sm:$0xff] %vm937_vm0, %v1794_v7 }
 0x11a   : > { %1920 = vst.msk [vmem:[%s2213_s24 + $0x7d0] sm:$0xff] %vm937_vm0, %v1795_v8  ;;  %1921 = vst.msk [vmem:[%s2213_s24 + $0x7d8] sm:$0xff] %vm937_vm0, %v1795_v8 }
 0x11b   : > { %1922 = vst.msk [vmem:[%s2213_s24 + $0x7e0] sm:$0xff] %vm937_vm0, %v1796_v9  ;;  %1923 = vst.msk [vmem:[%s2213_s24 + $0x7e8] sm:$0xff] %vm937_vm0, %v1796_v9  ;;  %v675_v11 = vpop.permute.xlu1 %674  ;;  %v670_v12 = vpop.permute.xlu0 %669 }
 0x11c   : > { %1924 = vst.msk [vmem:[%s2213_s24 + $0x7f0] sm:$0xff] %vm937_vm0, %v1797_v10  ;;  %1925 = vst.msk [vmem:[%s2213_s24 + $0x7f8] sm:$0xff] %vm937_vm0, %v1797_v10 }
 0x11d   : > { %1013 = vst.msk [vmem:[%s2213_s24 + $0x258] sm:$0xff] %vm937_vm0, %v675_v11  ;;  %1012 = vst.msk [vmem:[%s2213_s24 + $0x250] sm:$0xff] %vm937_vm0, %v670_v12 }
 0x11f   : > { %v685_v13 = vpop.permute.xlu1 %684  ;;  %v680_v14 = vpop.permute.xlu0 %679 }
 0x120   : > { %1015 = vst.msk [vmem:[%s2213_s24 + $0x268] sm:$0xff] %vm937_vm0, %v685_v13  ;;  %1014 = vst.msk [vmem:[%s2213_s24 + $0x260] sm:$0xff] %vm937_vm0, %v680_v14 }
 0x123   : > { %v695_v15 = vpop.permute.xlu1 %694  ;;  %v690_v16 = vpop.permute.xlu0 %689 }
 0x124   : > { %1017 = vst.msk [vmem:[%s2213_s24 + $0x278] sm:$0xff] %vm937_vm0, %v695_v15  ;;  %1016 = vst.msk [vmem:[%s2213_s24 + $0x270] sm:$0xff] %vm937_vm0, %v690_v16 }
 0x127   : > { %v705_v17 = vpop.permute.xlu1 %704  ;;  %v700_v18 = vpop.permute.xlu0 %699 }
 0x128   : > { %1019 = vst.msk [vmem:[%s2213_s24 + $0x288] sm:$0xff] %vm937_vm0, %v705_v17  ;;  %1018 = vst.msk [vmem:[%s2213_s24 + $0x280] sm:$0xff] %vm937_vm0, %v700_v18 }
 0x12b   : > { %v715_v19 = vpop.permute.xlu1 %714  ;;  %v710_v20 = vpop.permute.xlu0 %709 }
 0x12c   : > { %1021 = vst.msk [vmem:[%s2213_s24 + $0x298] sm:$0xff] %vm937_vm0, %v715_v19  ;;  %1020 = vst.msk [vmem:[%s2213_s24 + $0x290] sm:$0xff] %vm937_vm0, %v710_v20 }
 0x12f   : > { %v725_v21 = vpop.permute.xlu1 %724  ;;  %v720_v22 = vpop.permute.xlu0 %719 }
 0x130   : > { %1023 = vst.msk [vmem:[%s2213_s24 + $0x2a8] sm:$0xff] %vm937_vm0, %v725_v21  ;;  %1022 = vst.msk [vmem:[%s2213_s24 + $0x2a0] sm:$0xff] %vm937_vm0, %v720_v22 }
 0x133   : > { %v735_v23 = vpop.permute.xlu1 %734  ;;  %v730_v24 = vpop.permute.xlu0 %729 }
 0x134   : > { %1025 = vst.msk [vmem:[%s2213_s24 + $0x2b8] sm:$0xff] %vm937_vm0, %v735_v23  ;;  %1024 = vst.msk [vmem:[%s2213_s24 + $0x2b0] sm:$0xff] %vm937_vm0, %v730_v24 }
 0x137   : > { %v745_v25 = vpop.permute.xlu1 %744  ;;  %v740_v26 = vpop.permute.xlu0 %739 }
 0x138   : > { %1027 = vst.msk [vmem:[%s2213_s24 + $0x2c8] sm:$0xff] %vm937_vm0, %v745_v25  ;;  %1026 = vst.msk [vmem:[%s2213_s24 + $0x2c0] sm:$0xff] %vm937_vm0, %v740_v26 }
 0x13b   : > { %v755_v27 = vpop.permute.xlu1 %754  ;;  %v750_v28 = vpop.permute.xlu0 %749 }
 0x13c   : > { %1029 = vst.msk [vmem:[%s2213_s24 + $0x2d8] sm:$0xff] %vm937_vm0, %v755_v27  ;;  %1028 = vst.msk [vmem:[%s2213_s24 + $0x2d0] sm:$0xff] %vm937_vm0, %v750_v28 }
 0x13f   : > { %v765_v29 = vpop.permute.xlu1 %764  ;;  %v760_v30 = vpop.permute.xlu0 %759 }
 0x140   : > { %1031 = vst.msk [vmem:[%s2213_s24 + $0x2e8] sm:$0xff] %vm937_vm0, %v765_v29  ;;  %1030 = vst.msk [vmem:[%s2213_s24 + $0x2e0] sm:$0xff] %vm937_vm0, %v760_v30 }
 0x143   : > { %v775_v31 = vpop.permute.xlu1 %774  ;;  %v770_v32 = vpop.permute.xlu0 %769 }
 0x144   : > { %1033 = vst.msk [vmem:[%s2213_s24 + $0x2f8] sm:$0xff] %vm937_vm0, %v775_v31  ;;  %1032 = vst.msk [vmem:[%s2213_s24 + $0x2f0] sm:$0xff] %vm937_vm0, %v770_v32 }
 0x147   : > { %v785_v33 = vpop.permute.xlu1 %784  ;;  %v780_v34 = vpop.permute.xlu0 %779 }
 0x148   : > { %1035 = vst.msk [vmem:[%s2213_s24 + $0x308] sm:$0xff] %vm937_vm0, %v785_v33  ;;  %1034 = vst.msk [vmem:[%s2213_s24 + $0x300] sm:$0xff] %vm937_vm0, %v780_v34 }
 0x14b   : > { %v795_v35 = vpop.permute.xlu1 %794  ;;  %v790_v36 = vpop.permute.xlu0 %789 }
 0x14c   : > { %1037 = vst.msk [vmem:[%s2213_s24 + $0x318] sm:$0xff] %vm937_vm0, %v795_v35  ;;  %1036 = vst.msk [vmem:[%s2213_s24 + $0x310] sm:$0xff] %vm937_vm0, %v790_v36 }
 0x14f   : > { %v805_v37 = vpop.permute.xlu1 %804  ;;  %v800_v38 = vpop.permute.xlu0 %799 }
 0x150   : > { %1039 = vst.msk [vmem:[%s2213_s24 + $0x328] sm:$0xff] %vm937_vm0, %v805_v37  ;;  %1038 = vst.msk [vmem:[%s2213_s24 + $0x320] sm:$0xff] %vm937_vm0, %v800_v38 }
 0x153   : > { %v815_v39 = vpop.permute.xlu1 %814  ;;  %v810_v40 = vpop.permute.xlu0 %809 }
 0x154   : > { %1041 = vst.msk [vmem:[%s2213_s24 + $0x338] sm:$0xff] %vm937_vm0, %v815_v39  ;;  %1040 = vst.msk [vmem:[%s2213_s24 + $0x330] sm:$0xff] %vm937_vm0, %v810_v40 }
 0x157   : > { %v825_v41 = vpop.permute.xlu1 %824  ;;  %v820_v42 = vpop.permute.xlu0 %819 }
 0x158   : > { %1043 = vst.msk [vmem:[%s2213_s24 + $0x348] sm:$0xff] %vm937_vm0, %v825_v41  ;;  %1042 = vst.msk [vmem:[%s2213_s24 + $0x340] sm:$0xff] %vm937_vm0, %v820_v42 }
 0x15b   : > { %v835_v43 = vpop.permute.xlu1 %834  ;;  %v830_v44 = vpop.permute.xlu0 %829 }
 0x15c   : > { %1045 = vst.msk [vmem:[%s2213_s24 + $0x358] sm:$0xff] %vm937_vm0, %v835_v43  ;;  %1044 = vst.msk [vmem:[%s2213_s24 + $0x350] sm:$0xff] %vm937_vm0, %v830_v44 }
 0x15f   : > { %v845_v45 = vpop.permute.xlu1 %844  ;;  %v840_v46 = vpop.permute.xlu0 %839 }
 0x160   : > { %1047 = vst.msk [vmem:[%s2213_s24 + $0x368] sm:$0xff] %vm937_vm0, %v845_v45  ;;  %1046 = vst.msk [vmem:[%s2213_s24 + $0x360] sm:$0xff] %vm937_vm0, %v840_v46 }
 0x163   : > { %v855_v47 = vpop.permute.xlu1 %854  ;;  %v850_v48 = vpop.permute.xlu0 %849 }
 0x164   : > { %1049 = vst.msk [vmem:[%s2213_s24 + $0x378] sm:$0xff] %vm937_vm0, %v855_v47  ;;  %1048 = vst.msk [vmem:[%s2213_s24 + $0x370] sm:$0xff] %vm937_vm0, %v850_v48 }
 0x167   : > { %v865_v49 = vpop.permute.xlu1 %864  ;;  %v860_v50 = vpop.permute.xlu0 %859 }
 0x168   : > { %1051 = vst.msk [vmem:[%s2213_s24 + $0x388] sm:$0xff] %vm937_vm0, %v865_v49  ;;  %1050 = vst.msk [vmem:[%s2213_s24 + $0x380] sm:$0xff] %vm937_vm0, %v860_v50 }
 0x16b   : > { %v875_v51 = vpop.permute.xlu1 %874  ;;  %v870_v52 = vpop.permute.xlu0 %869 }
 0x16c   : > { %1053 = vst.msk [vmem:[%s2213_s24 + $0x398] sm:$0xff] %vm937_vm0, %v875_v51  ;;  %1052 = vst.msk [vmem:[%s2213_s24 + $0x390] sm:$0xff] %vm937_vm0, %v870_v52 }
 0x16f   : > { %v885_v53 = vpop.permute.xlu1 %884  ;;  %v880_v54 = vpop.permute.xlu0 %879 }
 0x170   : > { %1055 = vst.msk [vmem:[%s2213_s24 + $0x3a8] sm:$0xff] %vm937_vm0, %v885_v53  ;;  %1054 = vst.msk [vmem:[%s2213_s24 + $0x3a0] sm:$0xff] %vm937_vm0, %v880_v54 }
 0x173   : > { %v895_v55 = vpop.permute.xlu1 %894  ;;  %v890_v56 = vpop.permute.xlu0 %889 }
 0x174   : > { %1057 = vst.msk [vmem:[%s2213_s24 + $0x3b8] sm:$0xff] %vm937_vm0, %v895_v55  ;;  %1056 = vst.msk [vmem:[%s2213_s24 + $0x3b0] sm:$0xff] %vm937_vm0, %v890_v56 }
 0x177   : > { %v905_v57 = vpop.permute.xlu1 %904  ;;  %v900_v58 = vpop.permute.xlu0 %899 }
 0x178   : > { %1059 = vst.msk [vmem:[%s2213_s24 + $0x3c8] sm:$0xff] %vm937_vm0, %v905_v57  ;;  %1058 = vst.msk [vmem:[%s2213_s24 + $0x3c0] sm:$0xff] %vm937_vm0, %v900_v58 }
 0x17b   : > { %v915_v59 = vpop.permute.xlu1 %914  ;;  %v910_v60 = vpop.permute.xlu0 %909 }
 0x17c   : > { %1061 = vst.msk [vmem:[%s2213_s24 + $0x3d8] sm:$0xff] %vm937_vm0, %v915_v59  ;;  %1060 = vst.msk [vmem:[%s2213_s24 + $0x3d0] sm:$0xff] %vm937_vm0, %v910_v60 }
 0x17f   : > { %v925_v61 = vpop.permute.xlu1 %924  ;;  %v920_v62 = vpop.permute.xlu0 %919 }
 0x180   : > { %1063 = vst.msk [vmem:[%s2213_s24 + $0x3e8] sm:$0xff] %vm937_vm0, %v925_v61  ;;  %1062 = vst.msk [vmem:[%s2213_s24 + $0x3e0] sm:$0xff] %vm937_vm0, %v920_v62 }
 0x183   : > { %v935_v63 = vpop.permute.xlu1 %934  ;;  %v930_v0 = vpop.permute.xlu0 %929 }
 0x184   : > { %1065 = vst.msk [vmem:[%s2213_s24 + $0x3f8] sm:$0xff] %vm937_vm0, %v935_v63  ;;  %1064 = vst.msk [vmem:[%s2213_s24 + $0x3f0] sm:$0xff] %vm937_vm0, %v930_v0 }
 0x185 PF: > { %s12_s11 = sadd.s32 1, %s1978_s11   ;;  %s3123_s9 = smov %s1974_s10 }
 0x186   : > { %p9_p5 = scmp.ge.s32.totalorder %s12_s11, 4   ;;  %s3124_s10 = smov %s3126_s12 }
 0x188   :  { %11 = sbr.rel (!%p9_p5) target bundleno = 2 (0x2), region = 59 }

</bundles_post_ra>
